<compile_context>
chip_gen: v7x
topology: tpu7x:2x2x1
jax: 0.10.0
libtpu: 0.0.40
codegen_flags: <defaults>
</compile_context>

<pallas_src>
import functools

import jax
import jax.numpy as jnp
from jax.experimental import pallas as pl
from jax.experimental.pallas import tpu as pltpu


# ---------------------------------------------------------------------------
# Kernels
# ---------------------------------------------------------------------------

def _clamp_kernel(x_ref, w_ref, o_ref, *, thre, meth):
    """Fused CAM clamp for a block of full batch rows.

    x_ref: (NB, C, HW) native dtype   w_ref: (NB, C, 1) float32
    o_ref: (NB, C, HW) native dtype
    """
    w = w_ref[...]                                                  # (NB, C, 1) f32
    # f32 accumulation straight from the native-dtype block (per-vreg promote,
    # no persistent f32 copy of the whole slab).
    cam0 = jnp.sum(x_ref[...] * w, axis=1, keepdims=True)           # (NB, 1, HW) f32
    m = jnp.minimum(jnp.min(cam0, axis=2, keepdims=True), 0.0)      # (NB, 1, 1)
    cam = cam0 - m                                                   # (NB, 1, HW)
    t = thre * jnp.mean(cam, axis=2, keepdims=True)                  # (NB, 1, 1)
    denom = jnp.maximum(cam, 0.01)
    if meth == 2:
        ratio = t / denom                                            # (NB, 1, HW)
    else:
        # cam*(1-mask) + t*mask with mask = (cam > t)  ==  min(cam, t)
        ratio = jnp.minimum(cam, t) / denom
    # Fresh fused read for the single full-slab multiply; ratio broadcasts
    # over the channel axis.
    o_ref[...] = (x_ref[...] * ratio).astype(o_ref.dtype)


def _cam_accum_kernel(x_ref, w_ref, cam_ref, *, c_block, num_channels):
    """Fallback pass 1: accumulate cam = sum_c x*w over channel chunks."""
    c = pl.program_id(1)

    @pl.when(c == 0)
    def _():
        cam_ref[...] = jnp.zeros_like(cam_ref)

    prod = x_ref[...] * w_ref[...]                                   # (1, cb, HW) f32
    if num_channels % c_block:
        # Mask channels of a partial last chunk (block contents past C are
        # unspecified and must not enter the accumulator).
        ch = c * c_block + jax.lax.broadcasted_iota(jnp.int32, prod.shape, 1)
        prod = jnp.where(ch < num_channels, prod, 0.0)
    cam_ref[...] += jnp.sum(prod, axis=1, keepdims=True)


def _scale_kernel(x_ref, r_ref, o_ref):
    """Fallback pass 2: out = x * ratio (ratio broadcasts over channels)."""
    o_ref[...] = (x_ref[...] * r_ref[...]).astype(o_ref.dtype)


# ---------------------------------------------------------------------------
# Wrappers
# ---------------------------------------------------------------------------

def _vmem_capacity_bytes():
    try:
        return int(pltpu.get_tpu_info().vmem_capacity_bytes)
    except Exception:
        return 64 * 1024 * 1024   # conservative (v7x-sized) fallback


def _single_pass(xf, wf, meth, thre, nb, vmem_limit):
    N, C, HW = xf.shape
    itemsize = jnp.dtype(xf.dtype).itemsize
    cost = pl.CostEstimate(
        flops=3 * N * C * HW + 6 * N * HW,
        transcendentals=0,
        bytes_accessed=2 * N * C * HW * itemsize + N * C * 4,
    )
    kern = functools.partial(_clamp_kernel, thre=float(thre), meth=int(meth))
    return pl.pallas_call(
        kern,
        out_shape=jax.ShapeDtypeStruct((N, C, HW), xf.dtype),
        grid_spec=pltpu.PrefetchScalarGridSpec(
            num_scalar_prefetch=0,
            grid=(pl.cdiv(N, nb),),
            in_specs=[
                pl.BlockSpec((nb, C, HW), lambda n: (n, 0, 0)),
                pl.BlockSpec((nb, C, 1), lambda n: (n, 0, 0)),
            ],
            out_specs=pl.BlockSpec((nb, C, HW), lambda n: (n, 0, 0)),
        ),
        compiler_params=pltpu.CompilerParams(
            dimension_semantics=("parallel",),
            vmem_limit_bytes=vmem_limit,
        ),
        cost_estimate=cost,
    )(xf, wf)


def _chunked(xf, wf, meth, thre, c_block, vmem_limit):
    """Two-pass fallback for rows too large for a single VMEM block."""
    N, C, HW = xf.shape
    n_chunks = pl.cdiv(C, c_block)

    cam_kern = functools.partial(
        _cam_accum_kernel, c_block=int(c_block), num_channels=int(C))
    cam0 = pl.pallas_call(
        cam_kern,
        out_shape=jax.ShapeDtypeStruct((N, 1, HW), jnp.float32),
        grid_spec=pltpu.PrefetchScalarGridSpec(
            num_scalar_prefetch=0,
            grid=(N, n_chunks),
            in_specs=[
                pl.BlockSpec((1, c_block, HW), lambda n, c: (n, c, 0)),
                pl.BlockSpec((1, c_block, 1), lambda n, c: (n, c, 0)),
            ],
            out_specs=pl.BlockSpec((1, 1, HW), lambda n, c: (n, 0, 0)),
        ),
        compiler_params=pltpu.CompilerParams(
            dimension_semantics=("parallel", "arbitrary"),
            vmem_limit_bytes=vmem_limit,
        ),
    )(xf, wf)

    # Per-row scalars and per-pixel ratio on the tiny (N, 1, HW) f32 CAM.
    m = jnp.minimum(jnp.min(cam0, axis=2, keepdims=True), 0.0)
    cam = cam0 - m
    t = thre * jnp.mean(cam, axis=2, keepdims=True)
    denom = jnp.maximum(cam, 0.01)
    ratio = (t if meth == 2 else jnp.minimum(cam, t)) / denom

    return pl.pallas_call(
        _scale_kernel,
        out_shape=jax.ShapeDtypeStruct((N, C, HW), xf.dtype),
        grid_spec=pltpu.PrefetchScalarGridSpec(
            num_scalar_prefetch=0,
            grid=(N, n_chunks),
            in_specs=[
                pl.BlockSpec((1, c_block, HW), lambda n, c: (n, c, 0)),
                pl.BlockSpec((1, 1, HW), lambda n, c: (n, 0, 0)),
            ],
            out_specs=pl.BlockSpec((1, c_block, HW), lambda n, c: (n, c, 0)),
        ),
        compiler_params=pltpu.CompilerParams(
            dimension_semantics=("parallel", "parallel"),
            vmem_limit_bytes=vmem_limit,
        ),
    )(xf, ratio)


def clamp_forward(x, w=None, meth=1, thre=1.0, *, force_chunked=False, c_block=None):
    """Equivalent of Clamp(thre).forward(x, w, meth) for NCHW inputs."""
    if meth <= 0:
        return x
    if w is None:
        raise ValueError("Clamp.forward with meth > 0 requires per-channel weights `w`.")

    N, C, H, W = x.shape
    HW = H * W
    xf = x.reshape(N, C, HW)
    # Keep w in float32: it is tiny and downcasting only loses precision.
    wf = jnp.broadcast_to(w, (N, C, 1, 1)).reshape(N, C, 1).astype(jnp.float32)

    itemsize = jnp.dtype(x.dtype).itemsize
    vmem_phys = _vmem_capacity_bytes()
    vmem_limit = int(vmem_phys * 0.75)
    # Per batch row: double-buffered x in + out (4*itemsize) plus ~2 f32
    # temporaries per element (cam-product staging + output-multiply staging).
    per_row = C * HW * (4 * itemsize + 8)
    block_budget = vmem_limit // 2

    if force_chunked or per_row > block_budget:
        # Single row does not fit comfortably: channel-chunked two-pass path
        # (2 reads + 1 write of x, still HBM-roofline bound).
        if c_block is None:
            cb = block_budget // max(HW * (4 * itemsize + 8), 1)
        else:
            cb = int(c_block)
        cb = min(max(cb, 1), C)
        if cb < C:
            cb = max(8, (cb // 8) * 8)   # chunked second-minor dim must be 8-aligned
        # TODO(synk): if even an 8-channel chunk exceeds the budget (gigantic HW),
        # a further HW-chunked pass would be needed; the compiler will spill instead.
        out = _chunked(xf, wf, meth, thre, cb, vmem_limit)
    else:
        nb = max(1, min(N, block_budget // max(per_row, 1)))
        # Keep multiple grid steps: both v7x TensorCores get work and every
        # generation keeps DMA/compute overlap.
        nb = min(nb, max(1, N // 8))
        out = _single_pass(xf, wf, meth, thre, nb, vmem_limit)

    return out.reshape(N, C, H, W)


def _reference(x, w, meth=1, thre=1.0):
    """Pure-JAX reference mirroring the PyTorch code (computed in float32)."""
    if meth <= 0:
        return x
    x = x.astype(jnp.float32)
    w = jnp.asarray(w, jnp.float32)
    cam = jnp.sum(x * w, axis=1, keepdims=True)
    cam_min = jnp.min(jnp.min(cam, axis=2, keepdims=True), axis=3, keepdims=True)
    cam = cam - jnp.minimum(cam_min, 0.0)
    t = jnp.mean(jnp.mean(thre * cam, axis=2, keepdims=True), axis=3, keepdims=True)
    xs = x / jnp.maximum(cam, 0.01)
    if meth == 2:
        return xs * t
    mask = (cam > t).astype(jnp.float32)
    norm = cam * (1.0 - mask) + t * mask
    return xs * norm


if __name__ == "__main__":
    key = jax.random.PRNGKey(0)
    kx, kw = jax.random.split(key)

    # Case 1: f32, lane-friendly HW = 256, meth 1 and 2.
    N, C, H, W = 2, 4, 16, 16
    x = jax.random.normal(kx, (N, C, H, W), dtype=jnp.float32)
    w = jax.random.normal(kw, (N, C, 1, 1), dtype=jnp.float32)

    out = jax.block_until_ready(clamp_forward(x, w, meth=1, thre=1.0))
    ref = _reference(x, w, meth=1, thre=1.0)
    assert out.shape == (N, C, H, W)
    assert jnp.allclose(out, ref, atol=1e-5, rtol=1e-5)

    out2 = jax.block_until_ready(clamp_forward(x, w, meth=2, thre=1.0))
    ref2 = _reference(x, w, meth=2, thre=1.0)
    assert jnp.allclose(out2, ref2, atol=1e-5, rtol=1e-5)

    # Case 2: ragged last dim (HW = 49, typical 7x7 CAM map) — no padding pass.
    x3 = jax.random.normal(kx, (2, 4, 7, 7), dtype=jnp.float32)
    w3 = jax.random.normal(kw, (2, 4, 1, 1), dtype=jnp.float32)
    out3 = jax.block_until_ready(clamp_forward(x3, w3, meth=1, thre=1.0))
    ref3 = _reference(x3, w3, meth=1, thre=1.0)
    assert jnp.allclose(out3, ref3, atol=1e-5, rtol=1e-5)

    # Case 3: bf16 activations, f32 weights (only output rounding differs).
    xb = jax.random.normal(kx, (2, 8, 14, 14), dtype=jnp.bfloat16)
    wb = jax.random.normal(kw, (2, 8, 1, 1), dtype=jnp.float32)
    outb = jax.block_until_ready(clamp_forward(xb, wb, meth=1, thre=1.0))
    refb = _reference(xb, wb, meth=1, thre=1.0)
    assert jnp.allclose(outb.astype(jnp.float32), refb, atol=2e-2, rtol=2e-2)

    # Case 4: channel-chunked fallback path (forced), partial last C chunk.
    xc = jax.random.normal(kx, (2, 12, 14, 14), dtype=jnp.float32)
    wc = jax.random.normal(kw, (2, 12, 1, 1), dtype=jnp.float32)
    outc = jax.block_until_ready(
        clamp_forward(xc, wc, meth=1, thre=1.0, force_chunked=True, c_block=8))
    refc = _reference(xc, wc, meth=1, thre=1.0)
    assert jnp.allclose(outc, refc, atol=1e-5, rtol=1e-5)

    # Case 5: meth=0 passthrough.
    assert jnp.array_equal(clamp_forward(x, w, meth=0), x)

    print("KERNEL_OK")
</pallas_src>

<mosaic_0001>
module attributes {stable_mosaic.version = 11 : i64} {
  func.func @_clamp_kernel(%arg0: i32, %arg1: memref<1x4x256xf32, #tpu.memory_space<vmem>>, %arg2: memref<1x4x1xf32, #tpu.memory_space<vmem>>, %arg3: memref<1x4x256xf32, #tpu.memory_space<vmem>>) attributes {dimension_semantics = [#tpu.dimension_semantics<parallel>], iteration_bounds = array<i64: 2>, scalar_prefetch = 0 : i64, scratch_operands = 0 : i64, tpu.core_type = #tpu.core_type<tc>, window_params = [{transform_indices = @transform_0, window_bounds = array<i64: 1, 4, 256>}, {transform_indices = @transform_1, window_bounds = array<i64: 1, 4, 1>}, {transform_indices = @transform_2, window_bounds = array<i64: 1, 4, 256>}]} {
    %c0 = arith.constant 0 : index
    %c0_0 = arith.constant 0 : index
    %c0_1 = arith.constant 0 : index
    %0 = vector.load %arg2[%c0, %c0_0, %c0_1] : memref<1x4x1xf32, #tpu.memory_space<vmem>>, vector<1x4x1xf32>
    %c0_2 = arith.constant 0 : index
    %c0_3 = arith.constant 0 : index
    %c0_4 = arith.constant 0 : index
    %1 = vector.load %arg1[%c0_2, %c0_3, %c0_4] : memref<1x4x256xf32, #tpu.memory_space<vmem>>, vector<1x4x256xf32>
    %2 = vector.broadcast %0 : vector<1x4x1xf32> to vector<1x4x256xf32>
    %3 = arith.mulf %1, %2 : vector<1x4x256xf32>
    %cst = arith.constant dense<0.000000e+00> : vector<1x256xf32>
    %4 = vector.multi_reduction <add>, %3, %cst [1] : vector<1x4x256xf32> to vector<1x256xf32>
    %5 = vector.shape_cast %4 : vector<1x256xf32> to vector<1x1x256xf32>
    %cst_5 = arith.constant dense<0x7F800000> : vector<1x1xf32>
    %6 = vector.multi_reduction <minimumf>, %5, %cst_5 [2] : vector<1x1x256xf32> to vector<1x1xf32>
    %7 = vector.shape_cast %6 : vector<1x1xf32> to vector<1x1x1xf32>
    %cst_6 = arith.constant 0.000000e+00 : f32
    %8 = vector.broadcast %cst_6 : f32 to vector<1x1x1xf32>
    %9 = arith.minimumf %7, %8 : vector<1x1x1xf32>
    %10 = vector.broadcast %9 : vector<1x1x1xf32> to vector<1x1x256xf32>
    %11 = arith.subf %5, %10 : vector<1x1x256xf32>
    %cst_7 = arith.constant dense<0.000000e+00> : vector<1x1xf32>
    %12 = vector.multi_reduction <add>, %11, %cst_7 [2] : vector<1x1x256xf32> to vector<1x1xf32>
    %13 = vector.shape_cast %12 : vector<1x1xf32> to vector<1x1x1xf32>
    %cst_8 = arith.constant 2.560000e+02 : f32
    %14 = vector.broadcast %cst_8 : f32 to vector<1x1x1xf32>
    %15 = arith.divf %13, %14 : vector<1x1x1xf32>
    %cst_9 = arith.constant 1.000000e+00 : f32
    %16 = vector.broadcast %cst_9 : f32 to vector<1x1x1xf32>
    %17 = arith.mulf %16, %15 : vector<1x1x1xf32>
    %cst_10 = arith.constant 0.00999999977 : f32
    %18 = vector.broadcast %cst_10 : f32 to vector<1x1x256xf32>
    %19 = arith.maximumf %11, %18 : vector<1x1x256xf32>
    %20 = vector.broadcast %17 : vector<1x1x1xf32> to vector<1x1x256xf32>
    %21 = arith.minimumf %11, %20 : vector<1x1x256xf32>
    %22 = arith.divf %21, %19 : vector<1x1x256xf32>
    %c0_11 = arith.constant 0 : index
    %c0_12 = arith.constant 0 : index
    %c0_13 = arith.constant 0 : index
    %23 = vector.load %arg1[%c0_11, %c0_12, %c0_13] : memref<1x4x256xf32, #tpu.memory_space<vmem>>, vector<1x4x256xf32>
    %24 = vector.broadcast %22 : vector<1x1x256xf32> to vector<1x4x256xf32>
    %25 = arith.mulf %23, %24 : vector<1x4x256xf32>
    %c0_14 = arith.constant 0 : index
    %c0_15 = arith.constant 0 : index
    %c0_16 = arith.constant 0 : index
    %26 = vector.load %arg3[%c0_14, %c0_15, %c0_16] : memref<1x4x256xf32, #tpu.memory_space<vmem>>, vector<1x4x256xf32>
    tpu.vector_store %arg3[%c0_14, %c0_15, %c0_16], %25 {strides = array<i32>} : memref<1x4x256xf32, #tpu.memory_space<vmem>>, vector<1x4x256xf32>,
    return
  }
  func.func @transform_0(%arg0: i32) -> (i32, i32, i32) {
    %c0_i32 = arith.constant 0 : i32
    %c0_i32_0 = arith.constant 0 : i32
    %c0_i32_1 = arith.constant 0 : i32
    return %arg0, %c0_i32, %c0_i32_0 : i32, i32, i32
  }
  func.func @transform_1(%arg0: i32) -> (i32, i32, i32) {
    %c0_i32 = arith.constant 0 : i32
    %c0_i32_0 = arith.constant 0 : i32
    %c0_i32_1 = arith.constant 0 : i32
    return %arg0, %c0_i32, %c0_i32_0 : i32, i32, i32
  }
  func.func @transform_2(%arg0: i32) -> (i32, i32, i32) {
    %c0_i32 = arith.constant 0 : i32
    %c0_i32_0 = arith.constant 0 : i32
    %c0_i32_1 = arith.constant 0 : i32
    return %arg0, %c0_i32, %c0_i32_0 : i32, i32, i32
  }
}

</mosaic_0001>

<bundles_post_ra>
// kernel: tpu_custom_call.1
= control target key start
LH: loop header
LB: loop body
LE: loop exit
PB: predicated region body
PF: predicated region fallthrough
CT: control target
= control target key end

     0   :  { %7 = vsyncpa [#allocation3], 0  ;;  %s689_s0 = inlined_call_operand.hbm [shape: f32[2,4,256], index: 0, kind: input, shape index: {}]   ;;  %s690_s1 = inlined_call_operand.vmem [shape: f32[2,4,1], index: 1, kind: input, shape index: {}]   ;;  %s691_s2 = inlined_call_operand.hbm [shape: f32[2,4,256], index: 2, kind: output, shape index: {}]  }
   0x1   :  { %9 = vsyncpa [#allocation3 + $0x1], 0 }
   0x2   :  { %10 = vsyncpa [#allocation4], 0 }
   0x3   :  { %12 = vsyncpa [#allocation4 + $0x1], 0  ;;  %s519_s9 = smov 0   ;;  %s521_s10 = smov 0  }
   0x4   :  { %s523_s11 = smov 0   ;;  %s525_s12 = smov 0  }
   0x5 LB: > { %s540_s13 = sadd.s32 4294967295, %s498_s12   ;;  %s332_s14 = sadd.s32 4294967294, %s498_s12   ;;  %s498_s12 = sphi %s525_s12, %s706_s12   ;;  %s494_s11 = sphi %s523_s11, %s705_s11   ;;  %s490_s10 = sphi %s521_s10, %s704_s10   ;;  %s486_s9 = sphi %s519_s9, %s703_s9  }
   0x6   : > { %s544_s15 = sadd.s32 1, %s498_s12   ;;  %s25_s16 = sadd.s32 1, %s494_s11 }
   0x7   : > { %s22_s17 = ssub.s32 %s498_s12, %s544_s15  ;;  %p32_p0 = scmp.ne.s32.totalorder %s494_s11, %s490_s10 }
   0x8   : > { %p23_p1 = scmp.eq.s32.totalorder %s22_s17, 0  ;;  %p33_p2 = scmp.eq.s32.totalorder %s498_s12, 0 }
   0x9   : > { %p38_p3 = scmp.ne.s32.totalorder %s490_s10, %s486_s9  ;;  %p39_p4 = scmp.eq.s32.totalorder %s540_s13, 0 }
   0xa   : > { %s556_s18 = scalar_select %p23_p1, %s494_s11, %s25_s16  }
   0xb   : > { %p558_p5 = por %p33_p2, %p32_p0  ;;  %p562_p6 = por %p39_p4, %p38_p3 }
   0xc   : > { %p88_p7 = scmp.eq.s32.totalorder %s540_s13, 1  ;;  %p94_p8 = scmp.eq.s32.totalorder %s332_s14, 1 }
   0xd   : > { %p361_p10 = scmp.lt.s32.totalorder %s498_s12, 2  ;;  %s114_s23 = sand.u32 1, %s494_s11  }
   0xe   : > { %p569_p11 = por %p88_p7, %p32_p0  ;;  %p573_p12 = por %p94_p8, %p38_p3 }
   0xf   : > { %s347_s24 = sshll.u32 %s498_s12, 7  ;;  %s335_s25 = sshll.u32 %s114_s23, 3 }
  0x10   : > { %s695_s21 = scalar_select %p569_p11, 1, 0 }
  0x11   : > { %s696_s22 = scalar_select %p573_p12, 1, 0 }
  0x12   : > { %s582_s28 = scalar_lea.hbm %s689_s0, %s347_s24  ;;  %s118_s29 = scalar_lea.vmem [#allocation2], %s335_s25 }
  0x13   : > { %s126_s30 = sshll.u32 %s118_s29, 4  ;;  %p586_p13 = pnand %p361_p10, %p558_p5  ;;  %s590_s30 = int_to_ptr.vmem [resolvable:$true] %s126_s30 }
  0x14   : > { %s115_s4 = scalar_lea.sflag [#allocation3], %s114_s23  ;;  %s402_s5 = scalar_lea.hbm %s582_s28, 128 }
  0x15   : > { %p403_p2 = scmp.ne.s32.totalorder %s582_s28, %s402_s5  ;;  %p404_p3 = pneg %p586_p13 }
  0x16   : > { %s407_s8 = scalar_lea.hbm %s689_s0, 256  ;;  %p408_p5 = scmp.lt.u32.totalorder %s582_s28, %s689_s0 }
  0x17   : > { %p405_p4 = pnand %p404_p3, %p403_p2  ;;  %p409_p8 = scmp.lt.u32.totalorder %s407_s8, %s402_s5 }
  0x18   : > { %p411_p9 = scmp.lt.u32.totalorder %s402_s5, %s582_s28 }
  0x19   : > { %p406_p7 = pneg %p405_p4  ;;  %p410_p10 = por %p409_p8, %p408_p5 }
  0x1b   : > { %p412_p0 = por %p411_p9, %p410_p10 }
  0x1d   : > { %p413_p1 = pnand %p412_p0, %p406_p7 }
  0x1f   : > { %416 = shalt.err (!%p413_p1)
}
  0x20   : > { %s417_s17 = scalar_lea.vmem %s590_s30, 128  ;;  %s500_s19 = smov [#allocation2]  }
  0x21   : > { %p418_p2 = scmp.ne.s32.totalorder %s590_s30, %s417_s17  ;;  %s422_s23 = sshll.u32 %s500_s19, 4  ;;  %s423_s23 = int_to_ptr.vmem [resolvable:$false] %s422_s23 }
  0x22   : > { %s424_s24 = scalar_lea.vmem %s423_s23, 256  ;;  %p425_p11 = scmp.lt.s32.totalorder %s590_s30, %s423_s23 }
  0x23   : > { %p420_p4 = pnand %p418_p2, %p404_p3  ;;  %p426_p5 = scmp.lt.s32.totalorder %s424_s24, %s417_s17 }
  0x25   : > { %p421_p12 = pneg %p420_p4  ;;  %p427_p8 = por %p426_p5, %p425_p11 }
  0x27   : > { %p428_p9 = pnand %p427_p8, %p421_p12 }
  0x29   : > { %431 = shalt.err (!%p428_p9)
}
  0x2a   : > { %356 = dma.hbm_to_vmem [thread:$0]  (!%p586_p13), %s582_s28, 128, %s590_s30, %s115_s4  }
  0x2b   : > { %p698_p0 = scmp.lt.s32.totalorder %s498_s12, 3  ;;  %p699_p1 = scmp.ge.s32.totalorder %s498_s12, 1 }
  0x2d   : > { %p139_p3 = pnand %p699_p1, %p698_p0 }
  0x2e   : > { %s624_s25 = sand.u32 (!%p139_p3), 1, %s490_s10  }
  0x2f   : > { %142 = sbr.rel (%p139_p3) target bundleno = 525 (0x20d), region = 28  ;;  %s339_s26 = sshll.u32 (!%p139_p3), %s624_s25, 3 }
  0x30   : > { %s145_s27 = scalar_lea.sflag (!%p139_p3), [#allocation3], %s624_s25  ;;  %s148_s29 = scalar_lea.vmem (!%p139_p3), [#allocation2], %s339_s26 }
  0x36   : > { %477 = dma.done.wait (%p562_p6), %s145_s27, 128  }
  0x37   : > { %479 = vsyncadd (%p562_p6), %s145_s27, 4294967168  ;;  %p173_p11 = scmp.lt.s32.totalorder %s540_s13, 1  ;;  %v501_v0 = vmov 0   ;;  %v502_v2 = vmov 839922192   ;;  %v186_v4 = vlaneseq  ;;  %v178_v8 = vld [vmem:[%s148_s29] sm:$0xff] }
  0x38   : > { %397 = vset.pattern.permute.xlu0 %v501_v0  ;;  %v184_v3 = vunpack.c.l.s4 %v502_v2  ;;  %vm195_vm0 = vcmask 1043456   ;;  %s348_s20 = sshll.u32 %s540_s13, 7  ;;  %s172_s6 = scalar_lea.vmem [#allocation5], %s339_s26 }
  0x39   : > { %s174_s28 = scalar_select %p173_p11, %s540_s13, 1  ;;  %v187_v6 = vshrl.u32 %v186_v4, 7 }
  0x3a   : > { %v185_v5 = vunpack.c.0.s8 %v184_v3  ;;  %s250_s7 = sshll.u32 %s172_s6, 4  ;;  %s645_s16 = scalar_lea.hbm %s691_s2, %s348_s20  ;;  %s647_s7 = int_to_ptr.vmem [resolvable:$true] %s250_s7 }
  0x3b   : > { %s341_s30 = sshll.u32 %s174_s28, 2  ;;  %s236_s17 = scalar_lea.sflag [#allocation4], %s624_s25 }
  0x3c   : > { %s176_s5 = scalar_lea.vmem %s690_s1, %s341_s30  ;;  %v188_v7 = vsub.s32 %v185_v5, %v187_v6  ;;  %s432_s19 = scalar_lea.vmem %s647_s7, 128 }
  0x3d   : > { %v177_v1 = vld [vmem:[%s176_s5] sm:$0xf]  ;;  %p433_p6 = scmp.ne.s32.totalorder %s647_s7, %s432_s19  ;;  %p700_p12 = scmp.ne.s32.totalorder %s695_s21, 0 }
  0x3e   : > { %181 = vperm.xlu0 %397, %v177_v1   ;;  %s503_s13 = smov [#allocation5]  }
  0x3f   : > { %p434_p13 = pnand %p433_p6, %p700_p12  ;;  %s436_s23 = sshll.u32 %s503_s13, 4  ;;  %s437_s23 = int_to_ptr.vmem [resolvable:$false] %s436_s23 }
  0x40   : > { %s438_s24 = scalar_lea.vmem %s437_s23, 256  ;;  %p439_p10 = scmp.lt.s32.totalorder %s647_s7, %s437_s23 }
  0x41   : > { %p435_p7 = pneg %p434_p13  ;;  %p440_p2 = scmp.lt.s32.totalorder %s438_s24, %s432_s19 }
  0x43   : > { %p441_p4 = por %p440_p2, %p439_p10 }
  0x45   : > { %p442_p5 = pnand %p441_p4, %p435_p7 }
  0xbd   : > { %v182_v9 = vpop.permute.xlu0 %181 }
  0xbe   : > { %v189_v10 = vrot.slane %v182_v9, %v188_v7 }
  0xc0   : > { %v191_v11 = vmul.f32 %v189_v10, %v178_v8 }
  0xc2   : > { %v193_v12 = vcombine.high %v191_v11, %v191_v11  ;;  %v196_v13 = vsel %vm195_vm0, %v191_v11, 0.0 }
  0xc3   : > { %v197_v14 = vrot.slane %v196_v13, 4 }
  0xc4   : > { %v203_v15 = vsel %vm195_vm0, %v193_v12, 0.0 }
  0xc5   : > { %v198_v16 = vadd.f32 %v197_v14, %v196_v13  ;;  %v204_v17 = vrot.slane %v203_v15, 4 }
  0xc7   : > { %v199_v18 = vrot.slane %v198_v16, 2  ;;  %v205_v19 = vadd.f32 %v204_v17, %v203_v15 }
  0xc9   : > { %v200_v20 = vadd.f32 %v199_v18, %v198_v16  ;;  %v206_v21 = vrot.slane %v205_v19, 2 }
  0xcb   : > { %v201_v22 = vrot.slane %v200_v20, 1  ;;  %v207_v23 = vadd.f32 %v206_v21, %v205_v19 }
  0xcd   : > { %v208_v24 = vrot.slane %v207_v23, 1  ;;  %v202_v25 = vadd.f32 %v201_v22, %v200_v20 }
  0xcf   : > { %v209_v26 = vadd.f32 %v208_v24, %v207_v23 }
  0xd1   : > { %v210_v27 = vmin.f32 %v202_v25, %v209_v26 }
  0xd3   : > { %211 = vmin.xlane.f32.xlu0 %v210_v27 }
 0x160   : > { %v212_v28 = vpop.xlane.xlu0 %211 }
 0x161   : > { %v213_v29 = vmin.f32 %v212_v28, 0.0 }
 0x163   : > { %v214_v30 = vsub.f32 %v202_v25, %v213_v29  ;;  %v215_v31 = vsub.f32 %v209_v26, %v213_v29 }
 0x165   : > { %v216_v32 = vadd.f32 %v215_v31, %v214_v30  ;;  %v221_v33 = vmax.f32 %v214_v30, 0.01  ;;  %v222_v34 = vmax.f32 %v215_v31, 0.01 }
 0x167   : > { %217 = vadd.xlane.f32.xlu1 %v216_v32  ;;  %398 = vrcp.f32 %v221_v33 }
 0x168   : > { %400 = vrcp.f32 %v222_v34 }
 0x171   : > { %v399_v37 = vpop.eup %398 }
 0x172   : > { %v401_v40 = vpop.eup %400 }
 0x1f4   : > { %v218_v35 = vpop.xlane.xlu1 %217 }
 0x1f5   : > { %v220_v36 = vmul.f32 0.00390625, %v218_v35 }
 0x1f7   : > { %v223_v38 = vmin.f32 %v214_v30, %v220_v36  ;;  %v224_v39 = vmin.f32 %v215_v31, %v220_v36 }
 0x1f9   : > { %v226_v41 = vmul.f32 %v399_v37, %v223_v38  ;;  %v228_v42 = vmul.f32 %v401_v40, %v224_v39 }
 0x1fb   : > { %v231_v43 = vcombine.low %v226_v41, %v228_v42 }
 0x1fd   : > { %v233_v44 = vmul.f32 %v231_v43, %v178_v8 }
 0x1ff   : > { %234 = vst [vmem:[%s172_s6] sm:$0xff] %v233_v44 }
 0x200   : > { %445 = shalt.err (!%p442_p5)
}
 0x201   : > { %s446_s25 = scalar_lea.hbm %s645_s16, 128  ;;  %s450_s29 = scalar_lea.hbm %s691_s2, 256 }
 0x202   : > { %p447_p8 = scmp.ne.s32.totalorder %s645_s16, %s446_s25  ;;  %p451_p1 = scmp.lt.u32.totalorder %s645_s16, %s691_s2 }
 0x203   : > { %p452_p3 = scmp.lt.u32.totalorder %s450_s29, %s446_s25  ;;  %p454_p6 = scmp.lt.u32.totalorder %s446_s25, %s645_s16 }
 0x204   : > { %p448_p9 = pnand %p447_p8, %p700_p12 }
 0x205   : > { %p453_p11 = por %p452_p3, %p451_p1 }
 0x206   : > { %p449_p0 = pneg %p448_p9 }
 0x207   : > { %p455_p13 = por %p454_p6, %p453_p11 }
 0x209   : > { %p456_p7 = pnand %p455_p13, %p449_p0 }
 0x20b   : > { %459 = shalt.err (!%p456_p7)
}
 0x20c   : > { %351 = dma.vmem_to_hbm [thread:$0]  (%p700_p12), %s647_s7, 128, %s645_s16, %s236_s17  }
 0x20d PF: > { %s262_s3 = sand.u32 1, %s486_s9   ;;  %p701_p10 = scmp.ne.s32.totalorder %s696_s22, 0 }
 0x20e   : > { %p702_p2 = scmp.ge.s32.totalorder %s498_s12, 2  ;;  %s263_s4 = scalar_lea.sflag [#allocation4], %s262_s3 }
 0x210   : > { %p358_p4 = pnand %p702_p2, %p701_p10 }
 0x212   : > { %481 = dma.done.wait (!%p358_p4), %s263_s4, 128  }
 0x213   : > { %483 = vsyncadd (!%p358_p4), %s263_s4, 4294967168  ;;  %p15_p5 = scmp.ge.s32.totalorder %s544_s15, 4   ;;  %s703_s9 = smov %s490_s10 }
 0x214   : > { %s704_s10 = smov %s494_s11  ;;  %s705_s11 = smov %s556_s18 }
 0x215   : > { %s706_s12 = smov %s544_s15  ;;  %17 = sbr.rel (!%p15_p5) target bundleno = 5 (0x5), region = 76 }
 0x21c   :  { %268 = vsyncpa [#allocation3], 1 }
 0x21d   :  { %270 = vsyncpa [#allocation3 + $0x1], 1 }
 0x21e   :  { %271 = vsyncpa [#allocation4], 1 }
 0x21f   :  { %273 = vsyncpa [#allocation4 + $0x1], 1 }

</bundles_post_ra>
